<compile_context>
chip_gen: v7x
topology: tpu7x:2x2x1
jax: 0.10.0
libtpu: 0.0.40
codegen_flags: <defaults>
</compile_context>

<pallas_src>
import functools
import math

import jax
import jax.numpy as jnp
from jax.experimental import pallas as pl
from jax.experimental.pallas import tpu as pltpu

_EXP_ONE = math.exp(1.0)   # exp(y) with y == ones(3,3), folded to a literal
_Y_SHAPE = (3, 3)          # shape of the module-level constant y


def _soft_kernel(x_ref, o_ref, *, p1: int):
    # x_ref: (3, 3) full input in VMEM; select row p1 with a purely static slice.
    row = x_ref[p1:p1 + 1, :]                                       # (1, 3)
    # div = sum(exp(x[p1])) -> keep as (1, 1) so it stays vector-register resident.
    div = jnp.sum(jnp.exp(row), keepdims=True)                      # (1, 1)
    # exp(y) / div with y == ones(3,3): broadcast exact divide (hidden under launch/DMA).
    o_ref[...] = jnp.full(o_ref.shape, _EXP_ONE, o_ref.dtype) / div


def my_soft_module_forward(x, p1: int):
    """Pallas equivalent of MySoftModule(p1).forward(x).

    x : (3, 3) float32 input
    p1: static Python int row index (module "parameter")
    """
    assert 0 <= p1 < x.shape[0], f"p1={p1} out of bounds for x with {x.shape[0]} rows"
    return pl.pallas_call(
        functools.partial(_soft_kernel, p1=p1),
        out_shape=jax.ShapeDtypeStruct(_Y_SHAPE, jnp.float32),
        in_specs=[pl.BlockSpec(memory_space=pltpu.MemorySpace.VMEM)],
        out_specs=pl.BlockSpec(memory_space=pltpu.MemorySpace.VMEM),
        # 3 exps, 2 adds, 9 divides; 36B in + 36B out.
        cost_estimate=pl.CostEstimate(flops=12, transcendentals=3, bytes_accessed=72),
    )(x)


def my_soft_module_reference(x, p1: int):
    """Plain-JAX reference for correctness checking."""
    y = jnp.ones(_Y_SHAPE, dtype=jnp.float32)
    div = jnp.sum(jnp.exp(x[p1]))
    return jnp.exp(y) / div


if __name__ == "__main__":
    key = jax.random.PRNGKey(0)

    # module "parameter": row index selected in forward (deterministic)
    p1 = 1

    # forward input: (3, 3) float32, as implied by indexing x[p1] against the 3x3 `y`
    x = jax.random.normal(key, (3, 3), dtype=jnp.float32)

    out = my_soft_module_forward(x, p1)
    out = jax.block_until_ready(out)

    ref = my_soft_module_reference(x, p1)

    assert out.shape == _Y_SHAPE
    assert out.dtype == jnp.float32
    # exact divide in-kernel -> tight tolerance
    assert jnp.allclose(out, ref, rtol=1e-6, atol=1e-6), (out, ref)

    print("KERNEL_OK")
</pallas_src>

<mosaic_0001>
module attributes {stable_mosaic.version = 11 : i64} {
  func.func @_soft_kernel(%arg0: memref<3x3xf32, #tpu.memory_space<vmem>>, %arg1: memref<3x3xf32, #tpu.memory_space<vmem>>) attributes {dimension_semantics = [], scalar_prefetch = 0 : i64, scratch_operands = 0 : i64, tpu.core_type = #tpu.core_type<tc>} {
    %c1 = arith.constant 1 : index
    %c0 = arith.constant 0 : index
    %0 = vector.load %arg0[%c1, %c0] : memref<3x3xf32, #tpu.memory_space<vmem>>, vector<1x3xf32>
    %1 = math.exp %0 : vector<1x3xf32>
    %2 = vector.shape_cast %1 : vector<1x3xf32> to vector<1x1x3xf32>
    %cst = arith.constant dense<0.000000e+00> : vector<1xf32>
    %3 = vector.multi_reduction <add>, %2, %cst [1, 2] : vector<1x1x3xf32> to vector<1xf32>
    %4 = vector.shape_cast %3 : vector<1xf32> to vector<1x1x1xf32>
    %5 = vector.extract %4[0, 0, 0] : f32 from vector<1x1x1xf32>
    %6 = vector.broadcast %5 : f32 to vector<1x1xf32>
    %cst_0 = arith.constant 2.71828175 : f32
    %7 = vector.broadcast %cst_0 : f32 to vector<3x3xf32>
    %8 = vector.broadcast %6 : vector<1x1xf32> to vector<3x3xf32>
    %9 = arith.divf %7, %8 : vector<3x3xf32>
    %c0_1 = arith.constant 0 : index
    %c0_2 = arith.constant 0 : index
    %10 = vector.load %arg1[%c0_1, %c0_2] : memref<3x3xf32, #tpu.memory_space<vmem>>, vector<3x3xf32>
    tpu.vector_store %arg1[%c0_1, %c0_2], %9 {strides = array<i32>} : memref<3x3xf32, #tpu.memory_space<vmem>>, vector<3x3xf32>,
    return
  }
}

</mosaic_0001>

<bundles_post_ra>
// kernel: tpu_custom_call.1
= control target key start
LH: loop header
LB: loop body
LE: loop exit
PB: predicated region body
PF: predicated region fallthrough
CT: control target
= control target key end

     0   :  { %6 = vsyncpa [#allocation3], 0  ;;  %s147_s0 = inlined_call_operand.hbm [shape: f32[3,3], index: 0, kind: input, shape index: {}]   ;;  %s148_s1 = inlined_call_operand.hbm [shape: f32[3,3], index: 1, kind: output, shape index: {}]  }
   0x1   :  { %7 = vsyncpa [#allocation4], 0  ;;  %s111_s6 = smov [#allocation2]   ;;  %s63_s10 = scalar_lea.hbm %s147_s0, 64 }
   0x2   :  { %s14_s7 = sshll.u32 %s111_s6, 4  ;;  %p64_p0 = scmp.ne.s32.totalorder %s147_s0, %s63_s10  ;;  %s15_s7 = int_to_ptr.vmem [resolvable:$true] %s14_s7 }
   0x3   :  { %p67_p1 = scmp.lt.u32.totalorder %s63_s10, %s147_s0 }
   0x5   :  { %p69_p2 = pnand %p67_p1, %p64_p0 }
   0x7   :  { %72 = shalt.err (!%p69_p2)
}
   0x8   :  { %s73_s15 = scalar_lea.vmem %s15_s7, 64  ;;  %p78_p4 = scmp.lt.s32.totalorder %s15_s7, %s15_s7 }
   0x9   :  { %p74_p3 = scmp.ne.s32.totalorder %s15_s7, %s73_s15  ;;  %p79_p5 = scmp.lt.s32.totalorder %s73_s15, %s73_s15 }
   0xb   :  { %p80_p6 = por %p79_p5, %p78_p4 }
   0xd   :  { %p81_p7 = pnand %p80_p6, %p74_p3 }
   0xf   :  { %84 = shalt.err (!%p81_p7)
}
  0x10   :  { %17 = dma.hbm_to_vmem [thread:$0]  %s147_s0, 64, %s15_s7, [#allocation3]  }
  0x11   :  { %107 = dma.done.wait [#allocation3], 64  }
  0x12   :  { %108 = vsyncadd [#allocation3], 4294967232  ;;  %v21_v0 = vld [vmem:[#allocation2 + $0x1] sm:$0x1]  ;;  %vm24_vm0 = vcmask 16384   ;;  %s112_s0 = smov [#allocation5]  }
  0x13   :  { %v22_v1 = vmul.f32 1.442695, %v21_v0  ;;  %s46_s19 = sshll.u32 %s112_s0, 4  ;;  %vm38_vm1 = vcmask 18432   ;;  %s47_s19 = int_to_ptr.vmem [resolvable:$true] %s46_s19 }
  0x14   :  { %s85_s20 = scalar_lea.vmem %s47_s19, 64  ;;  %p90_p9 = scmp.lt.s32.totalorder %s47_s19, %s47_s19 }
  0x15   :  { %59 = vpow2.f32 %v22_v1  ;;  %p86_p8 = scmp.ne.s32.totalorder %s47_s19, %s85_s20  ;;  %p91_p10 = scmp.lt.s32.totalorder %s85_s20, %s85_s20 }
  0x17   :  { %p92_p11 = por %p91_p10, %p90_p9 }
  0x19   :  { %p93_p12 = pnand %p92_p11, %p86_p8 }
  0x1f   :  { %v60_v2 = vpop.eup %59 }
  0x20   :  { %v25_v3 = vsel %vm24_vm0, %v60_v2, 0.0 }
  0x21   :  { %26 = vadd.xlane.f32.xlu0 %v25_v3 }
  0xae   :  { %v27_v4 = vpop.xlane.xlu0 %26 }
  0xaf   :  { %v28_v5 = vrot.slane %v27_v4, 4 }
  0xb1   :  { %v29_v6 = vadd.f32 %v28_v5, %v27_v4 }
  0xb3   :  { %v30_v7 = vrot.slane %v29_v6, 2 }
  0xb5   :  { %v31_v8 = vadd.f32 %v30_v7, %v29_v6 }
  0xb7   :  { %v32_v9 = vrot.slane %v31_v8, 1 }
  0xb9   :  { %v33_v10 = vadd.f32 %v32_v9, %v31_v8 }
  0xbb   :  { %55 = vpush %v33_v10 }
  0xec   :  { %s56_s18 = spop %55 }
  0xed   :  { %v35_v11 = vstv %s56_s18 }
  0xee   :  { %61 = vrcp.f32 %v35_v11 }
  0xf8   :  { %v62_v12 = vpop.eup %61 }
  0xf9   :  { %v37_v13 = vmul.f32 2.7182817, %v62_v12 }
  0xfb   :  { %39 = vst.msk [vmem:[#allocation5] sm:$0x7] %vm38_vm1, %v37_v13 }
  0xfc   :  { %96 = shalt.err (!%p93_p12)
}
  0xfd   :  { %s97_s23 = scalar_lea.hbm %s148_s1, 64 }
  0xfe   :  { %p98_p13 = scmp.ne.s32.totalorder %s148_s1, %s97_s23  ;;  %p101_p0 = scmp.lt.u32.totalorder %s97_s23, %s148_s1 }
 0x100   :  { %p103_p1 = pnand %p101_p0, %p98_p13 }
 0x102   :  { %106 = shalt.err (!%p103_p1)
}
 0x103   :  { %49 = dma.vmem_to_hbm [thread:$0]  %s47_s19, 64, %s148_s1, [#allocation4]  }
 0x104   :  { %109 = dma.done.wait [#allocation4], 64  }
 0x105   :  { %110 = vsyncadd [#allocation4], 4294967232 }
 0x106   :  { %53 = vsyncpa [#allocation3], 1 }
 0x107   :  { %54 = vsyncpa [#allocation4], 1 }

</bundles_post_ra>
